<compile_context>
chip_gen: v6e
topology: v6e:2x2x1
jax: 0.10.0
libtpu: 0.0.40
codegen_flags: <defaults>
</compile_context>

<pallas_src>
import jax
import jax.numpy as jnp
from jax.experimental import pallas as pl
from jax.experimental.pallas import tpu as pltpu

LANE = 128
SUBLANE = 8


def _round_up(x, m):
    return ((x + m - 1) // m) * m


def mlp_kernel(x_ref, w1_ref, b1_ref, w2_ref, b2_ref, o_ref):
    # linear1 on the MXU, fp32 accumulation; bias + ReLU on the VPU.
    h = jnp.dot(x_ref[...], w1_ref[...], preferred_element_type=jnp.float32)
    h = jnp.maximum(h + b1_ref[...], 0.0)
    # linear2 on the MXU, fp32 accumulation; bias add on the VPU.
    out = jnp.dot(h, w2_ref[...], preferred_element_type=jnp.float32)
    o_ref[...] = (out + b2_ref[...]).astype(o_ref.dtype)


def _select_tiling(B, Din, Dh_p, Dout_p, *, tb_cap=1024,
                   vmem_budget=48 * 1024 * 1024):
    """Pick (TB, Bp, steps, vmem_limit_bytes).

    Resident (constant index_map, single-buffered): W1, W2, b1, b2.
    Streamed (double-buffered by the Pallas pipeline): x tile, out tile.
    The fp32 hidden intermediate (TB, Dh_p) counts as compiler scratch.
    """
    itemsize = 4  # fp32 everywhere
    resident = (Din * Dh_p + Dh_p * Dout_p + Dh_p + Dout_p) * itemsize
    per_row = (2 * (Din + Dout_p) + Dh_p) * itemsize
    # 2x headroom (regalloc / pipeline internals) on the streamed part.
    fit_tb = (vmem_budget // 2 - resident) // per_row
    fit_tb = max(SUBLANE, (fit_tb // SUBLANE) * SUBLANE)
    tb_max = min(tb_cap, fit_tb)

    B8 = _round_up(B, SUBLANE)
    if B <= SUBLANE:
        # Tiny batch: a single step; block == full array dim is always legal.
        TB, Bp, steps = B, B, 1
    else:
        # >= 2 (even) steps so "parallel" actually shards across v7x's 2 TCs
        # and each core gets work; fewer/fatter steps amortize ~0.35 us/step.
        steps = max(2, pl.cdiv(B8, tb_max))
        if steps % 2:
            steps += 1
        TB = _round_up(pl.cdiv(B8, steps), SUBLANE)
        Bp = TB * steps

    vmem_needed = (resident
                   + 2 * TB * (Din + Dout_p) * itemsize   # double-buffered x/out
                   + TB * Dh_p * itemsize)                # hidden intermediate
    vmem_limit = int(min(max(2 * vmem_needed, 16 * 1024 * 1024), vmem_budget))
    return TB, Bp, steps, vmem_limit


def prepare_params(w1, b1, w2, b2):
    """Pad params ONCE (outside the forward): Dh, Dout -> multiples of 128.

    Padded W1 columns / b1 entries / W2 rows / b2 entries are exactly zero, so
    padded hidden units contribute nothing to the real outputs.
    """
    Din, Dh = w1.shape
    Dout = w2.shape[1]
    Dh_p = _round_up(Dh, LANE)
    Dout_p = _round_up(Dout, LANE)
    w1_p = jnp.pad(w1.astype(jnp.float32), ((0, 0), (0, Dh_p - Dh)))
    b1_p = jnp.pad(b1.astype(jnp.float32), ((0, Dh_p - Dh),)).reshape(1, Dh_p)
    w2_p = jnp.pad(w2.astype(jnp.float32),
                   ((0, Dh_p - Dh), (0, Dout_p - Dout)))
    b2_p = jnp.pad(b2.astype(jnp.float32),
                   ((0, Dout_p - Dout),)).reshape(1, Dout_p)
    return w1_p, b1_p, w2_p, b2_p


def custom_module1_forward(x, w1_p, b1_p, w2_p, b2_p, out_dim, *, tb_cap=1024):
    """CustomModule1.forward: linear2(relu(linear1(x))). Returns fp32 (B, out_dim)."""
    B, Din = x.shape
    Dh_p = w1_p.shape[1]
    Dout_p = w2_p.shape[1]
    assert w2_p.shape[0] == Dh_p and b1_p.shape == (1, Dh_p)
    assert b2_p.shape == (1, Dout_p)

    TB, Bp, steps, vmem_limit = _select_tiling(B, Din, Dh_p, Dout_p,
                                               tb_cap=tb_cap)
    if Bp != B:
        x = jnp.pad(x, ((0, Bp - B), (0, 0)))

    flops = 2 * Bp * (Din * Dh_p + Dh_p * Dout_p)
    bytes_accessed = 4 * (Bp * Din + Din * Dh_p + Dh_p + Dh_p * Dout_p
                          + Dout_p + Bp * Dout_p)

    out = pl.pallas_call(
        mlp_kernel,
        out_shape=jax.ShapeDtypeStruct((Bp, Dout_p), jnp.float32),
        grid_spec=pl.GridSpec(
            grid=(steps,),
            in_specs=[
                pl.BlockSpec((TB, Din), lambda i: (i, 0)),      # x tile streams
                pl.BlockSpec((Din, Dh_p), lambda i: (0, 0)),    # W1 resident
                pl.BlockSpec((1, Dh_p), lambda i: (0, 0)),      # b1 resident
                pl.BlockSpec((Dh_p, Dout_p), lambda i: (0, 0)),  # W2 resident
                pl.BlockSpec((1, Dout_p), lambda i: (0, 0)),    # b2 resident
            ],
            out_specs=pl.BlockSpec((TB, Dout_p), lambda i: (i, 0)),
        ),
        compiler_params=pltpu.CompilerParams(
            dimension_semantics=("parallel",),   # 2-TC sharding on v7x
            vmem_limit_bytes=vmem_limit,
        ),
        cost_estimate=pl.CostEstimate(
            flops=flops, transcendentals=0, bytes_accessed=bytes_accessed),
    )(x, w1_p, b1_p, w2_p, b2_p)

    # Only pay for the slice when padding actually happened.
    if Bp != B or Dout_p != out_dim:
        out = out[:B, :out_dim]
    return out


def init_params(key, inputt, hidden, output, dtype=jnp.float32):
    """Deterministic PyTorch-Linear-style init (uniform(-1/sqrt(fan_in), ...)).

    Weights stored pre-transposed: W1 (in, hidden), W2 (hidden, out).
    """
    k1, k2, k3, k4 = jax.random.split(key, 4)
    bound1 = 1.0 / (inputt ** 0.5)
    bound2 = 1.0 / (hidden ** 0.5)
    w1 = jax.random.uniform(k1, (inputt, hidden), dtype, -bound1, bound1)
    b1 = jax.random.uniform(k2, (hidden,), dtype, -bound1, bound1)
    w2 = jax.random.uniform(k3, (hidden, output), dtype, -bound2, bound2)
    b2 = jax.random.uniform(k4, (output,), dtype, -bound2, bound2)
    return w1, b1, w2, b2


if __name__ == "__main__":
    # Shapes consistent with CustomModule1(inputt, hidden, output);
    # B=256 exercises the tiled (grid=2, parallel) pipelined path.
    B, inputt, hidden, output = 256, 32, 64, 16

    key = jax.random.PRNGKey(0)
    kx, kp = jax.random.split(key)
    x = jax.random.normal(kx, (B, inputt), jnp.float32)
    w1, b1, w2, b2 = init_params(kp, inputt, hidden, output)

    # Pad / lay out the static params once, outside the per-call forward.
    params = prepare_params(w1, b1, w2, b2)

    fwd = jax.jit(lambda xx: custom_module1_forward(xx, *params, output))
    out = jax.block_until_ready(fwd(x))

    # Full fp32 reference (module semantics).
    ref = jnp.maximum(x @ w1 + b1, 0.0) @ w2 + b2

    assert out.shape == (B, output), out.shape
    assert jnp.allclose(out, ref, atol=1e-3, rtol=1e-3), (
        float(jnp.max(jnp.abs(out - ref))))

    print("KERNEL_OK")
</pallas_src>

<mosaic_0001>
module attributes {stable_mosaic.version = 11 : i64} {
  func.func @mlp_kernel(%arg0: i32, %arg1: memref<128x32xf32, #tpu.memory_space<vmem>>, %arg2: memref<32x128xf32, #tpu.memory_space<vmem>>, %arg3: memref<1x128xf32, #tpu.memory_space<vmem>>, %arg4: memref<128x128xf32, #tpu.memory_space<vmem>>, %arg5: memref<1x128xf32, #tpu.memory_space<vmem>>, %arg6: memref<128x128xf32, #tpu.memory_space<vmem>>) attributes {dimension_semantics = [#tpu.dimension_semantics<parallel>], iteration_bounds = array<i64: 2>, scalar_prefetch = 0 : i64, scratch_operands = 0 : i64, tpu.core_type = #tpu.core_type<tc>, window_params = [{transform_indices = @transform_0, window_bounds = array<i64: 128, 32>}, {pipeline_mode = #tpu.pipeline_mode<synchronous>, transform_indices = @transform_1, window_bounds = array<i64: 32, 128>}, {pipeline_mode = #tpu.pipeline_mode<synchronous>, transform_indices = @transform_2, window_bounds = array<i64: 1, 128>}, {pipeline_mode = #tpu.pipeline_mode<synchronous>, transform_indices = @transform_3, window_bounds = array<i64: 128, 128>}, {pipeline_mode = #tpu.pipeline_mode<synchronous>, transform_indices = @transform_4, window_bounds = array<i64: 1, 128>}, {transform_indices = @transform_5, window_bounds = array<i64: 128, 128>}]} {
    %c0 = arith.constant 0 : index
    %c0_0 = arith.constant 0 : index
    %0 = vector.load %arg1[%c0, %c0_0] : memref<128x32xf32, #tpu.memory_space<vmem>>, vector<128x32xf32>
    %c0_1 = arith.constant 0 : index
    %c0_2 = arith.constant 0 : index
    %1 = vector.load %arg2[%c0_1, %c0_2] : memref<32x128xf32, #tpu.memory_space<vmem>>, vector<32x128xf32>
    %cst = arith.constant dense<0.000000e+00> : vector<128x128xf32>
    %2 = tpu.matmul %0, %1, %cst {dimension_numbers = #tpu.dot_dimension_numbers<[1], [0], [0], [1], [0, 0, 1, 1], [], []>} : vector<128x32xf32>, vector<32x128xf32>, vector<128x128xf32> -> vector<128x128xf32>
    %c0_3 = arith.constant 0 : index
    %c0_4 = arith.constant 0 : index
    %3 = vector.load %arg3[%c0_3, %c0_4] : memref<1x128xf32, #tpu.memory_space<vmem>>, vector<1x128xf32>
    %4 = vector.broadcast %3 : vector<1x128xf32> to vector<128x128xf32>
    %5 = arith.addf %2, %4 : vector<128x128xf32>
    %cst_5 = arith.constant 0.000000e+00 : f32
    %6 = vector.broadcast %cst_5 : f32 to vector<128x128xf32>
    %7 = arith.maximumf %5, %6 : vector<128x128xf32>
    %c0_6 = arith.constant 0 : index
    %c0_7 = arith.constant 0 : index
    %8 = vector.load %arg4[%c0_6, %c0_7] : memref<128x128xf32, #tpu.memory_space<vmem>>, vector<128x128xf32>
    %cst_8 = arith.constant dense<0.000000e+00> : vector<128x128xf32>
    %9 = tpu.matmul %7, %8, %cst_8 {dimension_numbers = #tpu.dot_dimension_numbers<[1], [0], [0], [1], [0, 0, 1, 1], [], []>} : vector<128x128xf32>, vector<128x128xf32>, vector<128x128xf32> -> vector<128x128xf32>
    %c0_9 = arith.constant 0 : index
    %c0_10 = arith.constant 0 : index
    %10 = vector.load %arg5[%c0_9, %c0_10] : memref<1x128xf32, #tpu.memory_space<vmem>>, vector<1x128xf32>
    %11 = vector.broadcast %10 : vector<1x128xf32> to vector<128x128xf32>
    %12 = arith.addf %9, %11 : vector<128x128xf32>
    %c0_11 = arith.constant 0 : index
    %c0_12 = arith.constant 0 : index
    %13 = vector.load %arg6[%c0_11, %c0_12] : memref<128x128xf32, #tpu.memory_space<vmem>>, vector<128x128xf32>
    tpu.vector_store %arg6[%c0_11, %c0_12], %12 {strides = array<i32>} : memref<128x128xf32, #tpu.memory_space<vmem>>, vector<128x128xf32>,
    return
  }
  func.func @transform_0(%arg0: i32) -> (i32, i32) {
    %c0_i32 = arith.constant 0 : i32
    %c0_i32_0 = arith.constant 0 : i32
    return %arg0, %c0_i32 : i32, i32
  }
  func.func @transform_1(%arg0: i32) -> (i32, i32) {
    %c0_i32 = arith.constant 0 : i32
    %c0_i32_0 = arith.constant 0 : i32
    %c0_i32_1 = arith.constant 0 : i32
    return %c0_i32, %c0_i32_0 : i32, i32
  }
  func.func @transform_2(%arg0: i32) -> (i32, i32) {
    %c0_i32 = arith.constant 0 : i32
    %c0_i32_0 = arith.constant 0 : i32
    %c0_i32_1 = arith.constant 0 : i32
    return %c0_i32, %c0_i32_0 : i32, i32
  }
  func.func @transform_3(%arg0: i32) -> (i32, i32) {
    %c0_i32 = arith.constant 0 : i32
    %c0_i32_0 = arith.constant 0 : i32
    %c0_i32_1 = arith.constant 0 : i32
    return %c0_i32, %c0_i32_0 : i32, i32
  }
  func.func @transform_4(%arg0: i32) -> (i32, i32) {
    %c0_i32 = arith.constant 0 : i32
    %c0_i32_0 = arith.constant 0 : i32
    %c0_i32_1 = arith.constant 0 : i32
    return %c0_i32, %c0_i32_0 : i32, i32
  }
  func.func @transform_5(%arg0: i32) -> (i32, i32) {
    %c0_i32 = arith.constant 0 : i32
    %c0_i32_0 = arith.constant 0 : i32
    return %arg0, %c0_i32 : i32, i32
  }
}

</mosaic_0001>

<bundles_post_ra>
// kernel: _lambda_.1
= control target key start
LH: loop header
LB: loop body
LE: loop exit
PB: predicated region body
PF: predicated region fallthrough
CT: control target
= control target key end

     0   :  { %s952_s18 = smov 0   ;;  %s1094_s0 = inlined_call_operand.vmem [shape: f32[256,32], index: 0, kind: input, shape index: {}]   ;;  %s1095_s1 = inlined_call_operand.vmem [shape: f32[32,128], index: 1, kind: input, shape index: {}]   ;;  %s1096_s2 = inlined_call_operand.vmem [shape: f32[1,128], index: 2, kind: input, shape index: {}]   ;;  %s1097_s3 = inlined_call_operand.vmem [shape: f32[128,128], index: 3, kind: input, shape index: {}]   ;;  %s1098_s4 = inlined_call_operand.vmem [shape: f32[1,128], index: 4, kind: input, shape index: {}]   ;;  %s1099_s5 = inlined_call_operand.vmem [shape: f32[256,128], index: 5, kind: output, shape index: {}]  }
   0x1 LB: > { %s705_s19 = sadd.s32 4294967295, %s920_s18   ;;  %p709_p0 = scmp.ge.s32.totalorder %s920_s18, 1  ;;  %s920_s18 = sphi %s952_s18, %s15_s18  }
   0x2   : > { %p188_p1 = scmp.lt.s32.totalorder %s920_s18, 3 }
   0x4   : > { %p189_p2 = pnand %p709_p0, %p188_p1 }
   0x5   : > { %s710_s24 = sshll.u32 (!%p189_p2), %s705_s19, 4 }
   0x6   : > { %192 = sbr.rel (%p189_p2) target bundleno = 446 (0x1be), region = 40  ;;  %p217_p3 = scmp.lt.s32.totalorder (!%p189_p2), %s710_s24, 31 }
   0xb   : > { %v247_v0 = vld [vmem:[%s1095_s1 + $0x18] sm:$0xff]  ;;  %v246_v1 = vld [vmem:[%s1095_s1 + $0x10] sm:$0xff]  ;;  %v245_v3 = vld [vmem:[%s1095_s1 + $0x8] sm:$0xff]  ;;  %s1101_s24 = smov (!%p217_p3, %s710_s24), 31  ;;  %vm255_vm0 = vcmask 261120  }
   0xc   : > { %786 = vmatprep.subr.mxu0 %v247_v0  ;;  %v480_v2 = vld [vmem:[%s1097_s3 + $0x78] sm:$0xff]  ;;  %v479_v4 = vld [vmem:[%s1097_s3 + $0x70] sm:$0xff]  ;;  %v244_v5 = vld [vmem:[%s1095_s1] sm:$0xff]  ;;  %s711_s8 = sshll.u32 %s1101_s24, 3 }
   0xd   : > { %787 = vmatpush3.msra.mxu0 %v247_v0  ;;  %874 = vmatprep.subr.mxu1 %v480_v2  ;;  %v478_v6 = vld [vmem:[%s1097_s3 + $0x68] sm:$0xff]  ;;  %s989_s13 = scalar_lea.vmem %s1094_s0, %s711_s8  ;;  %v477_v11 = vld [vmem:[%s1097_s3 + $0x60] sm:$0xff]  ;;  %v476_v14 = vld [vmem:[%s1097_s3 + $0x58] sm:$0xff]  ;;  %s1073_s26 = scalar_lea.vmem %s1099_s5, %s711_s8 }
   0xe   : > { %788 = vmatprep.subr.mxu0 %v246_v1  ;;  %890 = vmatpush3.msra.mxu1 %v480_v2  ;;  %v228_v7 = vld [vmem:[%s989_s13] sm:$0xff]  ;;  %v229_v8 = vld [vmem:[%s989_s13 + $0x8] sm:$0xff]  ;;  %v230_v9 = vld [vmem:[%s989_s13 + $0x10] sm:$0xff] }
   0xf   : > { %789 = vmatpush3.msra.mxu0 %v246_v1  ;;  %875 = vmatprep.subr.mxu1 %v479_v4  ;;  %v231_v10 = vld [vmem:[%s989_s13 + $0x18] sm:$0xff]  ;;  %v232_v12 = vld [vmem:[%s989_s13 + $0x20] sm:$0xff]  ;;  %v233_v13 = vld [vmem:[%s989_s13 + $0x28] sm:$0xff] }
  0x10   : > { %790 = vmatprep.subr.mxu0 %v245_v3  ;;  %891 = vmatpush3.msra.mxu1 %v479_v4  ;;  %v234_v15 = vld [vmem:[%s989_s13 + $0x30] sm:$0xff]  ;;  %v235_v17 = vld [vmem:[%s989_s13 + $0x38] sm:$0xff]  ;;  %v474_v18 = vld [vmem:[%s1097_s3 + $0x48] sm:$0xff] }
  0x11   : > { %791 = vmatpush3.msra.mxu0 %v245_v3  ;;  %876 = vmatprep.subr.mxu1 %v478_v6  ;;  %v475_v16 = vld [vmem:[%s1097_s3 + $0x50] sm:$0xff]  ;;  %v236_v19 = vld [vmem:[%s989_s13 + $0x40] sm:$0xff]  ;;  %v237_v21 = vld [vmem:[%s989_s13 + $0x48] sm:$0xff] }
  0x12   : > { %792 = vmatprep.subr.mxu0 %v244_v5  ;;  %892 = vmatpush3.msra.mxu1 %v478_v6  ;;  %v473_v20 = vld [vmem:[%s1097_s3 + $0x40] sm:$0xff]  ;;  %v472_v22 = vld [vmem:[%s1097_s3 + $0x38] sm:$0xff]  ;;  %v238_v23 = vld [vmem:[%s989_s13 + $0x50] sm:$0xff] }
  0x13   : > { %793 = vmatpush3.msra.mxu0 %v244_v5  ;;  %794 = vmatprep.mubr.msk.f32.mxu0 %vm255_vm0, %v228_v7  ;;  %v471_v24 = vld [vmem:[%s1097_s3 + $0x30] sm:$0xff]  ;;  %v239_v25 = vld [vmem:[%s989_s13 + $0x58] sm:$0xff]  ;;  %v470_v26 = vld [vmem:[%s1097_s3 + $0x28] sm:$0xff] }
  0x14   : > { %795 = vmatmul.mubr.msk.f32.vlgmr.msra.gmra.mxu0 %vm255_vm0, %v229_v8  ;;  %818 = vmatprep.subr.mxu0 %v480_v2  ;;  %v240_v27 = vld [vmem:[%s989_s13 + $0x60] sm:$0xff]  ;;  %v241_v29 = vld [vmem:[%s989_s13 + $0x68] sm:$0xff]  ;;  %v242_v30 = vld [vmem:[%s989_s13 + $0x70] sm:$0xff] }
  0x15   : > { %797 = vmatprep.mubr.msk.f32.mxu0 %vm255_vm0, %v230_v9  ;;  %819 = vmatpush3.msra.mxu0 %v480_v2  ;;  %v469_v28 = vld [vmem:[%s1097_s3 + $0x20] sm:$0xff]  ;;  %v243_v31 = vld [vmem:[%s989_s13 + $0x78] sm:$0xff]  ;;  %v467_v33 = vld [vmem:[%s1097_s3 + $0x10] sm:$0xff] }
  0x16   : > { %820 = vmatprep.subr.mxu0 %v479_v4  ;;  %877 = vmatprep.subr.mxu1 %v477_v11  ;;  %v468_v32 = vld [vmem:[%s1097_s3 + $0x18] sm:$0xff]  ;;  %v466_v34 = vld [vmem:[%s1097_s3 + $0x8] sm:$0xff]  ;;  %v465_v35 = vld [vmem:[%s1097_s3] sm:$0xff] }
  0x17   : > { %821 = vmatpush3.msra.mxu0 %v479_v4  ;;  %893 = vmatpush3.msra.mxu1 %v477_v11  ;;  %v714_v36 = vld [vmem:[%s1096_s2] ss:$0 sm:$0xff] }
  0x18   : > { %798 = vmatmul.mubr.msk.f32.gmra.mxu0 %vm255_vm0, %v231_v10  ;;  %822 = vmatprep.subr.mxu0 %v478_v6 }
  0x19   : > { %800 = vmatprep.mubr.msk.f32.mxu0 %vm255_vm0, %v232_v12  ;;  %823 = vmatpush3.msra.mxu0 %v478_v6 }
  0x1a   : > { %824 = vmatprep.subr.mxu0 %v477_v11  ;;  %878 = vmatprep.subr.mxu1 %v476_v14 }
  0x1b   : > { %825 = vmatpush3.msra.mxu0 %v477_v11  ;;  %894 = vmatpush3.msra.mxu1 %v476_v14 }
  0x1c   : > { %801 = vmatmul.mubr.msk.f32.gmra.mxu0 %vm255_vm0, %v233_v13  ;;  %826 = vmatprep.subr.mxu0 %v476_v14 }
  0x1d   : > { %803 = vmatprep.mubr.msk.f32.mxu0 %vm255_vm0, %v234_v15  ;;  %827 = vmatpush3.msra.mxu0 %v476_v14 }
  0x1e   : > { %828 = vmatprep.subr.mxu0 %v475_v16  ;;  %879 = vmatprep.subr.mxu1 %v475_v16 }
  0x1f   : > { %829 = vmatpush3.msra.mxu0 %v475_v16  ;;  %895 = vmatpush3.msra.mxu1 %v475_v16 }
  0x20   : > { %804 = vmatmul.mubr.msk.f32.gmra.mxu0 %vm255_vm0, %v235_v17  ;;  %830 = vmatprep.subr.mxu0 %v474_v18 }
  0x21   : > { %806 = vmatprep.mubr.msk.f32.mxu0 %vm255_vm0, %v236_v19  ;;  %831 = vmatpush3.msra.mxu0 %v474_v18 }
  0x22   : > { %832 = vmatprep.subr.mxu0 %v473_v20  ;;  %880 = vmatprep.subr.mxu1 %v474_v18 }
  0x23   : > { %833 = vmatpush3.msra.mxu0 %v473_v20  ;;  %896 = vmatpush3.msra.mxu1 %v474_v18 }
  0x24   : > { %807 = vmatmul.mubr.msk.f32.gmra.mxu0 %vm255_vm0, %v237_v21  ;;  %834 = vmatprep.subr.mxu0 %v472_v22  ;;  %v731_v21 = vld [vmem:[%s1098_s4] ss:$0 sm:$0xff] }
  0x25   : > { %809 = vmatprep.mubr.msk.f32.mxu0 %vm255_vm0, %v238_v23  ;;  %835 = vmatpush3.msra.mxu0 %v472_v22 }
  0x26   : > { %836 = vmatprep.subr.mxu0 %v471_v24  ;;  %881 = vmatprep.subr.mxu1 %v473_v20 }
  0x27   : > { %837 = vmatpush3.msra.mxu0 %v471_v24  ;;  %897 = vmatpush3.msra.mxu1 %v473_v20 }
  0x28   : > { %810 = vmatmul.mubr.msk.f32.gmra.mxu0 %vm255_vm0, %v239_v25  ;;  %838 = vmatprep.subr.mxu0 %v470_v26 }
  0x29   : > { %812 = vmatprep.mubr.msk.f32.mxu0 %vm255_vm0, %v240_v27  ;;  %839 = vmatpush3.msra.mxu0 %v470_v26 }
  0x2a   : > { %840 = vmatprep.subr.mxu0 %v469_v28  ;;  %882 = vmatprep.subr.mxu1 %v472_v22 }
  0x2b   : > { %841 = vmatpush3.msra.mxu0 %v469_v28  ;;  %898 = vmatpush3.msra.mxu1 %v472_v22 }
  0x2c   : > { %813 = vmatmul.mubr.msk.f32.gmra.mxu0 %vm255_vm0, %v241_v29  ;;  %883 = vmatprep.subr.mxu1 %v471_v24 }
  0x2d   : > { %815 = vmatprep.mubr.msk.f32.mxu0 %vm255_vm0, %v242_v30  ;;  %899 = vmatpush3.msra.mxu1 %v471_v24 }
  0x2e   : > { %884 = vmatprep.subr.mxu1 %v470_v26  ;;  %842 = vmatprep.subr.mxu0 %v468_v32 }
  0x2f   : > { %900 = vmatpush3.msra.mxu1 %v470_v26  ;;  %843 = vmatpush3.msra.mxu0 %v468_v32 }
  0x30   : > { %816 = vmatmul.mubr.msk.f32.gmra.mxu0 %vm255_vm0, %v243_v31  ;;  %885 = vmatprep.subr.mxu1 %v469_v28 }
  0x31   : > { %901 = vmatpush3.msra.mxu1 %v469_v28  ;;  %844 = vmatprep.subr.mxu0 %v467_v33 }
  0x32   : > { %886 = vmatprep.subr.mxu1 %v468_v32  ;;  %845 = vmatpush3.msra.mxu0 %v467_v33 }
  0x33   : > { %902 = vmatpush3.msra.mxu1 %v468_v32  ;;  %846 = vmatprep.subr.mxu0 %v466_v34 }
  0x34   : > { %887 = vmatprep.subr.mxu1 %v467_v33  ;;  %847 = vmatpush3.msra.mxu0 %v466_v34 }
  0x35   : > { %903 = vmatpush3.msra.mxu1 %v467_v33  ;;  %848 = vmatprep.subr.mxu0 %v465_v35 }
  0x36   : > { %888 = vmatprep.subr.mxu1 %v466_v34  ;;  %849 = vmatpush3.msra.mxu0 %v465_v35 }
  0x37   : > { %904 = vmatpush3.msra.mxu1 %v466_v34 }
  0x38   : > { %889 = vmatprep.subr.mxu1 %v465_v35 }
  0x39   : > { %905 = vmatpush3.msra.mxu1 %v465_v35 }
  0xd4   : > { %v796_v37 = vpop.f32.mrf.mxu0 }
  0xd5   : > { %v376_v38 = vadd.f32 %v796_v37, %v714_v36 }
  0xd6   : > { %v370_v39 = vpop.f32.mrf.mxu0 }
  0xd7   : > { %v371_v40 = vadd.f32 %v714_v36, %v370_v39  ;;  %v450_v43 = vmax.f32 %v376_v38, 0.0 }
  0xd8   : > { %v799_v41 = vpop.f32.mrf.mxu0 }
  0xd9   : > { %v449_v42 = vmax.f32 %v371_v40, 0.0  ;;  %v386_v44 = vadd.f32 %v799_v41, %v714_v36 }
  0xda   : > { %v380_v45 = vpop.f32.mrf.mxu0 }
  0xdb   : > { %v381_v46 = vadd.f32 %v714_v36, %v380_v45  ;;  %850 = vmatprep.mubr.f32.mxu0 %v449_v42  ;;  %v452_v49 = vmax.f32 %v386_v44, 0.0 }
  0xdc   : > { %v802_v47 = vpop.f32.mrf.mxu0  ;;  %851 = vmatmul.mubr.f32.vlgmr.msra.gmra.mxu0 %v450_v43 }
  0xdd   : > { %v451_v48 = vmax.f32 %v381_v46, 0.0  ;;  %v396_v50 = vadd.f32 %v802_v47, %v714_v36 }
  0xde   : > { %v390_v51 = vpop.f32.mrf.mxu0 }
  0xdf   : > { %v391_v52 = vadd.f32 %v714_v36, %v390_v51  ;;  %853 = vmatprep.mubr.f32.mxu0 %v451_v48  ;;  %v454_v55 = vmax.f32 %v396_v50, 0.0 }
  0xe0   : > { %v805_v53 = vpop.f32.mrf.mxu0  ;;  %854 = vmatmul.mubr.f32.gmra.mxu0 %v452_v49 }
  0xe1   : > { %v453_v54 = vmax.f32 %v391_v52, 0.0  ;;  %v406_v56 = vadd.f32 %v805_v53, %v714_v36 }
  0xe2   : > { %v400_v57 = vpop.f32.mrf.mxu0 }
  0xe3   : > { %856 = vmatprep.mubr.f32.mxu0 %v453_v54  ;;  %v401_v58 = vadd.f32 %v714_v36, %v400_v57  ;;  %v456_v61 = vmax.f32 %v406_v56, 0.0 }
  0xe4   : > { %v808_v59 = vpop.f32.mrf.mxu0  ;;  %857 = vmatmul.mubr.f32.gmra.mxu0 %v454_v55 }
  0xe5   : > { %v455_v60 = vmax.f32 %v401_v58, 0.0  ;;  %v416_v62 = vadd.f32 %v808_v59, %v714_v36 }
  0xe6   : > { %v410_v63 = vpop.f32.mrf.mxu0 }
  0xe7   : > { %v411_v0 = vadd.f32 %v714_v36, %v410_v63  ;;  %859 = vmatprep.mubr.f32.mxu1 %v455_v60  ;;  %v458_v3 = vmax.f32 %v416_v62, 0.0 }
  0xe8   : > { %v811_v1 = vpop.f32.mrf.mxu0  ;;  %860 = vmatmul.mubr.f32.vlgmr.msra.gmra.mxu1 %v456_v61 }
  0xe9   : > { %v457_v2 = vmax.f32 %v411_v0, 0.0  ;;  %v426_v4 = vadd.f32 %v811_v1, %v714_v36 }
  0xea   : > { %v420_v5 = vpop.f32.mrf.mxu0 }
  0xeb   : > { %v421_v6 = vadd.f32 %v714_v36, %v420_v5  ;;  %862 = vmatprep.mubr.f32.mxu1 %v457_v2  ;;  %v460_v9 = vmax.f32 %v426_v4, 0.0 }
  0xec   : > { %v814_v7 = vpop.f32.mrf.mxu0  ;;  %863 = vmatmul.mubr.f32.gmra.mxu1 %v458_v3 }
  0xed   : > { %v459_v8 = vmax.f32 %v421_v6, 0.0  ;;  %v436_v10 = vadd.f32 %v814_v7, %v714_v36 }
  0xee   : > { %v430_v11 = vpop.f32.mrf.mxu0 }
  0xef   : > { %v431_v12 = vadd.f32 %v714_v36, %v430_v11  ;;  %865 = vmatprep.mubr.f32.mxu1 %v459_v8  ;;  %v462_v15 = vmax.f32 %v436_v10, 0.0 }
  0xf0   : > { %v817_v13 = vpop.f32.mrf.mxu0  ;;  %866 = vmatmul.mubr.f32.gmra.mxu1 %v460_v9 }
  0xf1   : > { %v461_v14 = vmax.f32 %v431_v12, 0.0  ;;  %v446_v16 = vadd.f32 %v817_v13, %v714_v36 }
  0xf2   : > { %v440_v17 = vpop.f32.mrf.mxu0 }
  0xf3   : > { %v441_v18 = vadd.f32 %v714_v36, %v440_v17  ;;  %868 = vmatprep.mubr.f32.mxu1 %v461_v14  ;;  %v464_v20 = vmax.f32 %v446_v16, 0.0 }
  0xf4   : > { %869 = vmatmul.mubr.f32.gmra.mxu1 %v462_v15 }
  0xf5   : > { %v463_v19 = vmax.f32 %v441_v18, 0.0 }
  0xf7   : > { %871 = vmatprep.mubr.f32.mxu1 %v463_v19 }
  0xf8   : > { %872 = vmatmul.mubr.f32.gmra.mxu1 %v464_v20 }
 0x19c   : > { %v852_v22 = vpop.f32.mrf.mxu0 }
 0x19d   : > { %v560_v23 = vadd.f32 %v852_v22, %v731_v21 }
 0x19e   : > { %v554_v24 = vpop.f32.mrf.mxu0 }
 0x19f   : > { %634 = vst [vmem:[%s1073_s26 + $0x8] sm:$0xff] %v560_v23  ;;  %v555_v25 = vadd.f32 %v731_v21, %v554_v24 }
 0x1a0   : > { %v855_v26 = vpop.f32.mrf.mxu0 }
 0x1a1   : > { %633 = vst [vmem:[%s1073_s26] sm:$0xff] %v555_v25  ;;  %v570_v27 = vadd.f32 %v855_v26, %v731_v21 }
 0x1a2   : > { %v564_v28 = vpop.f32.mrf.mxu0 }
 0x1a3   : > { %636 = vst [vmem:[%s1073_s26 + $0x18] sm:$0xff] %v570_v27  ;;  %v565_v29 = vadd.f32 %v731_v21, %v564_v28 }
 0x1a4   : > { %v858_v30 = vpop.f32.mrf.mxu0 }
 0x1a5   : > { %635 = vst [vmem:[%s1073_s26 + $0x10] sm:$0xff] %v565_v29  ;;  %v580_v31 = vadd.f32 %v858_v30, %v731_v21 }
 0x1a6   : > { %v574_v32 = vpop.f32.mrf.mxu0 }
 0x1a7   : > { %638 = vst [vmem:[%s1073_s26 + $0x28] sm:$0xff] %v580_v31  ;;  %v575_v33 = vadd.f32 %v731_v21, %v574_v32 }
 0x1a8   : > { %v861_v34 = vpop.f32.mrf.mxu1 }
 0x1a9   : > { %637 = vst [vmem:[%s1073_s26 + $0x20] sm:$0xff] %v575_v33  ;;  %v590_v35 = vadd.f32 %v861_v34, %v731_v21 }
 0x1aa   : > { %v584_v36 = vpop.f32.mrf.mxu1 }
 0x1ab   : > { %640 = vst [vmem:[%s1073_s26 + $0x38] sm:$0xff] %v590_v35  ;;  %v585_v37 = vadd.f32 %v731_v21, %v584_v36 }
 0x1ac   : > { %v864_v38 = vpop.f32.mrf.mxu1 }
 0x1ad   : > { %639 = vst [vmem:[%s1073_s26 + $0x30] sm:$0xff] %v585_v37  ;;  %v600_v39 = vadd.f32 %v864_v38, %v731_v21 }
 0x1ae   : > { %v594_v40 = vpop.f32.mrf.mxu1 }
 0x1af   : > { %642 = vst [vmem:[%s1073_s26 + $0x48] sm:$0xff] %v600_v39  ;;  %v595_v41 = vadd.f32 %v731_v21, %v594_v40 }
 0x1b0   : > { %v867_v42 = vpop.f32.mrf.mxu1 }
 0x1b1   : > { %641 = vst [vmem:[%s1073_s26 + $0x40] sm:$0xff] %v595_v41  ;;  %v610_v43 = vadd.f32 %v867_v42, %v731_v21 }
 0x1b2   : > { %v604_v44 = vpop.f32.mrf.mxu1 }
 0x1b3   : > { %644 = vst [vmem:[%s1073_s26 + $0x58] sm:$0xff] %v610_v43  ;;  %v605_v45 = vadd.f32 %v731_v21, %v604_v44 }
 0x1b4   : > { %v870_v46 = vpop.f32.mrf.mxu1 }
 0x1b5   : > { %643 = vst [vmem:[%s1073_s26 + $0x50] sm:$0xff] %v605_v45  ;;  %v620_v47 = vadd.f32 %v870_v46, %v731_v21 }
 0x1b6   : > { %v614_v48 = vpop.f32.mrf.mxu1 }
 0x1b7   : > { %646 = vst [vmem:[%s1073_s26 + $0x68] sm:$0xff] %v620_v47  ;;  %v615_v49 = vadd.f32 %v731_v21, %v614_v48 }
 0x1b8   : > { %v873_v50 = vpop.f32.mrf.mxu1 }
 0x1b9   : > { %645 = vst [vmem:[%s1073_s26 + $0x60] sm:$0xff] %v615_v49  ;;  %v630_v51 = vadd.f32 %v873_v50, %v731_v21 }
 0x1ba   : > { %v624_v52 = vpop.f32.mrf.mxu1 }
 0x1bb   : > { %648 = vst [vmem:[%s1073_s26 + $0x78] sm:$0xff] %v630_v51  ;;  %v625_v53 = vadd.f32 %v731_v21, %v624_v52 }
 0x1bd   : > { %647 = vst [vmem:[%s1073_s26 + $0x70] sm:$0xff] %v625_v53 }
 0x1be PF: > { %s15_s18 = sadd.s32 1, %s920_s18  }
 0x1bf   : > { %p12_p4 = scmp.ge.s32.totalorder %s15_s18, 4  }
 0x1c1   :  { %14 = sbr.rel (!%p12_p4) target bundleno = 1 (0x1), region = 70 }

</bundles_post_ra>
